<compile_context>
chip_gen: v6e
topology: v6e:2x2x1
jax: 0.10.0
libtpu: 0.0.40
codegen_flags: <defaults>
</compile_context>

<pallas_src>
import functools

import jax
import jax.numpy as jnp
from jax.experimental import pallas as pl
from jax.experimental.pallas import tpu as pltpu

_LANE = 128


def _dice_partial_kernel(p_ref, t_ref, acc_ref, *, power, rows, tile_r,
                         need_mask):
    """Accumulate lane-wide partial sums of p*t (num) and p^pow + t^pow (den).

    Block shapes:
      p_ref / t_ref : (bn, tile_r, 128)
      acc_ref       : (bn, 2, 128)   row 0 = num partials, row 1 = den partials
    Grid: (batch_tiles, n_split, k_steps); acc_ref is indexed by (s, i) so it
    stays VMEM-resident across the k (reduction) axis.
    """
    k = pl.program_id(2)

    @pl.when(k == 0)
    def _init():
        acc_ref[...] = jnp.zeros_like(acc_ref)

    p = p_ref[...].astype(jnp.float32)
    t = t_ref[...].astype(jnp.float32)

    num_c = p * t
    if power == 1:
        den_c = p + t
    elif power == 2:
        den_c = p * p + t * t
    elif power == 3:
        den_c = p * p * p + t * t * t
    elif power == 4:
        p2 = p * p
        t2 = t * t
        den_c = p2 * p2 + t2 * t2
    else:
        den_c = p ** power + t ** power   # non-integer p: generic pow (EUP)

    def _accum(nc, dc):
        # Sublane-axis reduce only; the single cross-lane reduce happens once
        # in the wrapper on a tiny (n_split, N, 2, 128) array.
        acc_ref[:, 0:1, :] += jnp.sum(nc, axis=1, keepdims=True)
        acc_ref[:, 1:2, :] += jnp.sum(dc, axis=1, keepdims=True)

    if need_mask:
        # Only the very last row tile (last split, last k step) is partial;
        # every other step runs the mask-free fast path.
        is_last = jnp.logical_and(
            pl.program_id(1) == pl.num_programs(1) - 1,
            k == pl.num_programs(2) - 1)

        @pl.when(jnp.logical_not(is_last))
        def _fast():
            _accum(num_c, den_c)

        @pl.when(is_last)
        def _masked():
            row0 = (rows // tile_r) * tile_r   # static: last tile's row offset
            ridx = jax.lax.broadcasted_iota(jnp.int32, num_c.shape, 1) + row0
            valid = ridx < rows
            _accum(jnp.where(valid, num_c, 0.0),
                   jnp.where(valid, den_c, 0.0))
    else:
        _accum(num_c, den_c)


def _default_tile_rows():
    """Generation-aware default row-tile: bigger blocks on v7x-like chips."""
    try:
        cap = int(getattr(pltpu.get_tpu_info(), "vmem_capacity_bytes"))
        if cap <= (64 << 20):          # v7x-style: less VMEM, much faster HBM
            return 16384               # 8 MiB per f32 input block
    except Exception:
        pass
    return 8192                        # 4 MiB per f32 input block (v5e/v6e)


def binary_dice_loss(predict, target, smooth=1.0, p=2, reduction="mean",
                     tile_rows=None):
    """Pallas implementation of BinaryDiceLoss.forward.

    predict/target: arrays of shape [N, *] (e.g. NCHW), same shape.  target
    may be passed in a narrower dtype (e.g. bf16 for a binary mask); math is
    done in f32 inside the kernel.
    Returns scalar for 'mean'/'sum', shape [N] for 'none'.
    """
    assert predict.shape[0] == target.shape[0], \
        "predict & target batch size don't match"
    n = predict.shape[0]
    pr = predict.reshape(n, -1)
    tg = target.reshape(n, -1)
    d = pr.shape[1]

    rows = d // _LANE
    d_main = rows * _LANE
    d_rem = d - d_main

    if rows > 0:
        if tile_rows is None:
            tile_rows = _default_tile_rows()
        # Multiple of 32 so bf16 (16,128) / int8 (32,128) sublane packing
        # never forces a relayout for narrow-dtype targets.
        tile_rows = max(32, (int(tile_rows) // 32) * 32)

        if rows >= tile_rows:
            tile_r = tile_rows
            bn = 1
        else:
            # Small per-row feature count: pack several batch rows per block
            # so each DMA stays large.  tile_r == rows is the full axis, so the
            # (8,128) divisibility rule is satisfied even if rows % 8 != 0.
            tile_r = rows
            bytes_per_row = rows * _LANE * 4        # f32 upper bound
            bn = max(1, (tile_rows * _LANE * 4) // max(bytes_per_row, 1))
            bn = min(n, bn)

        batch_tiles = pl.cdiv(n, bn)
        row_tiles = pl.cdiv(rows, tile_r)
        need_mask = (rows % tile_r) != 0

        # Split the reduction axis into a second parallel grid dim so v7x's
        # second TensorCore has work when there is only one batch tile.
        n_split = 1
        if batch_tiles == 1 and row_tiles >= 2 and row_tiles % 2 == 0:
            n_split = 2
        k_steps = row_tiles // n_split

        pr_main = pr if d_rem == 0 else pr[:, :d_main]
        tg_main = tg if d_rem == 0 else tg[:, :d_main]
        pr3 = pr_main.reshape(n, rows, _LANE)
        tg3 = tg_main.reshape(n, rows, _LANE)

        kernel = functools.partial(
            _dice_partial_kernel, power=p, rows=rows, tile_r=tile_r,
            need_mask=need_mask)

        # Explicit VMEM budget: 2 inputs x 2 pipeline buffers + headroom,
        # so v5e's 16 MiB scoped default never constrains the tile choice.
        in_block_bytes = bn * tile_r * _LANE * (pr3.dtype.itemsize
                                                + tg3.dtype.itemsize)
        vmem_limit = int(max(2 * in_block_bytes + (6 << 20), 20 << 20))

        bytes_accessed = (pr3.size * pr3.dtype.itemsize
                          + tg3.size * tg3.dtype.itemsize
                          + n_split * n * 2 * _LANE * 4)
        cost = pl.CostEstimate(flops=6 * n * rows * _LANE,
                               transcendentals=0,
                               bytes_accessed=bytes_accessed)

        in_idx = lambda i, s, k: (i, s * k_steps + k, 0)

        acc = pl.pallas_call(
            kernel,
            out_shape=jax.ShapeDtypeStruct((n_split, n, 2, _LANE),
                                           jnp.float32),
            grid=(batch_tiles, n_split, k_steps),
            in_specs=[
                pl.BlockSpec((bn, tile_r, _LANE), in_idx),
                pl.BlockSpec((bn, tile_r, _LANE), in_idx),
            ],
            out_specs=pl.BlockSpec((None, bn, 2, _LANE),
                                   lambda i, s, k: (s, i, 0, 0)),
            compiler_params=pltpu.CompilerParams(
                dimension_semantics=("parallel", "parallel", "arbitrary"),
                vmem_limit_bytes=vmem_limit),
            cost_estimate=cost,
        )(pr3, tg3)

        num = jnp.sum(acc[:, :, 0, :], axis=(0, 2))
        den = jnp.sum(acc[:, :, 1, :], axis=(0, 2))
    else:
        num = jnp.zeros((n,), jnp.float32)
        den = jnp.zeros((n,), jnp.float32)

    if d_rem > 0:
        # Tail of < 128 features per batch row: negligible, done in plain JAX.
        pr_t = pr[:, d_main:].astype(jnp.float32)
        tg_t = tg[:, d_main:].astype(jnp.float32)
        num = num + jnp.sum(pr_t * tg_t, axis=1)
        den = den + jnp.sum(pr_t ** p + tg_t ** p, axis=1)

    num = num + jnp.float32(smooth)
    den = den + jnp.float32(smooth)
    loss = 1.0 - num / den

    if reduction == "mean":
        return jnp.mean(loss)
    elif reduction == "sum":
        return jnp.sum(loss)
    elif reduction == "none":
        return loss
    else:
        raise Exception("Unexpected reduction {}".format(reduction))


def _reference(predict, target, smooth=1.0, p=2, reduction="mean"):
    n = predict.shape[0]
    pr = predict.reshape(n, -1).astype(jnp.float32)
    tg = target.reshape(n, -1).astype(jnp.float32)
    num = jnp.sum(pr * tg, axis=1) + smooth
    den = jnp.sum(pr ** p + tg ** p, axis=1) + smooth
    loss = 1.0 - num / den
    if reduction == "mean":
        return jnp.mean(loss)
    if reduction == "sum":
        return jnp.sum(loss)
    return loss


if __name__ == "__main__":
    key = jax.random.PRNGKey(0)
    k1, k2, k3, k4 = jax.random.split(key, 4)

    # Test 1: NCHW, D % 128 == 0 (batch-packed block path, bf16 binary mask).
    N, C, H, W = 2, 4, 16, 16
    predict = jax.nn.sigmoid(jax.random.normal(k1, (N, C, H, W), jnp.float32))
    target_f32 = (jax.random.uniform(k2, (N, C, H, W)) > 0.5).astype(jnp.float32)
    target = target_f32.astype(jnp.bfloat16)   # lossless for a binary mask

    out = binary_dice_loss(predict, target, smooth=1.0, p=2, reduction="mean")
    out = jax.block_until_ready(out)
    ref = _reference(predict, target_f32, smooth=1.0, p=2, reduction="mean")
    assert jnp.allclose(out, ref, atol=1e-6, rtol=1e-5), (out, ref)

    # Test 2: masked last row-tile + split reduction axis (N=1, tiny tile
    # override so the split/mask machinery is exercised at small shapes).
    pr2 = jax.nn.sigmoid(jax.random.normal(k3, (1, 48 * 128), jnp.float32))
    tg2 = (jax.random.uniform(k4, (1, 48 * 128)) > 0.5).astype(jnp.float32)
    out2 = jax.block_until_ready(
        binary_dice_loss(pr2, tg2, reduction="none", tile_rows=32))
    ref2 = _reference(pr2, tg2, reduction="none")
    assert jnp.allclose(out2, ref2, atol=1e-6, rtol=1e-4), (out2, ref2)

    # Test 3: D % 128 != 0 tail path + sum reduction.
    pr3_ = jax.nn.sigmoid(jax.random.normal(k1, (2, 1024 + 37), jnp.float32))
    tg3_ = (jax.random.uniform(k2, (2, 1024 + 37)) > 0.5).astype(jnp.float32)
    out3 = jax.block_until_ready(
        binary_dice_loss(pr3_, tg3_, reduction="sum"))
    ref3 = _reference(pr3_, tg3_, reduction="sum")
    assert jnp.allclose(out3, ref3, atol=1e-6, rtol=1e-4), (out3, ref3)

    print("KERNEL_OK")
</pallas_src>

<mosaic_0001>
module attributes {stable_mosaic.version = 11 : i64} {
  func.func @_dice_partial_kernel(%arg0: i32, %arg1: i32, %arg2: i32, %arg3: memref<2x8x128xf32, #tpu.memory_space<vmem>>, %arg4: memref<2x8x128xbf16, #tpu.memory_space<vmem>>, %arg5: memref<1x2x2x128xf32, #tpu.memory_space<vmem>>) attributes {dimension_semantics = [#tpu.dimension_semantics<parallel>, #tpu.dimension_semantics<parallel>, #tpu.dimension_semantics<arbitrary>], iteration_bounds = array<i64: 1, 1, 1>, scalar_prefetch = 0 : i64, scratch_operands = 0 : i64, tpu.core_type = #tpu.core_type<tc>, window_params = [{transform_indices = @transform_0, window_bounds = array<i64: 2, 8, 128>}, {transform_indices = @transform_1, window_bounds = array<i64: 2, 8, 128>}, {transform_indices = @transform_2, window_bounds = array<i64: 1, 2, 2, 128>}]} {
    %c0_i32 = arith.constant 0 : i32
    %0 = arith.cmpi eq, %arg2, %c0_i32 : i32
    %1 = arith.extui %0 : i1 to i32
    %c0_i32_0 = arith.constant 0 : i32
    %2 = arith.cmpi ne, %1, %c0_i32_0 : i32
    scf.if %2 {
      %cst_22 = arith.constant 0.000000e+00 : f32
      %26 = vector.broadcast %cst_22 : f32 to vector<2x2x128xf32>
      %c0_23 = arith.constant 0 : index
      %c0_24 = arith.constant 0 : index
      %c0_25 = arith.constant 0 : index
      %c0_26 = arith.constant 0 : index
      %27 = vector.load %arg5[%c0_23, %c0_24, %c0_25, %c0_26] : memref<1x2x2x128xf32, #tpu.memory_space<vmem>>, vector<1x2x2x128xf32>
      %28 = vector.shape_cast %27 : vector<1x2x2x128xf32> to vector<2x2x128xf32>
      %29 = vector.shape_cast %26 : vector<2x2x128xf32> to vector<1x2x2x128xf32>
      tpu.vector_store %arg5[%c0_23, %c0_24, %c0_25, %c0_26], %29 {strides = array<i32>} : memref<1x2x2x128xf32, #tpu.memory_space<vmem>>, vector<1x2x2x128xf32>,
    } else {
    }
    %c0 = arith.constant 0 : index
    %c0_1 = arith.constant 0 : index
    %c0_2 = arith.constant 0 : index
    %3 = vector.load %arg3[%c0, %c0_1, %c0_2] : memref<2x8x128xf32, #tpu.memory_space<vmem>>, vector<2x8x128xf32>
    %c0_3 = arith.constant 0 : index
    %c0_4 = arith.constant 0 : index
    %c0_5 = arith.constant 0 : index
    %4 = vector.load %arg4[%c0_3, %c0_4, %c0_5] : memref<2x8x128xbf16, #tpu.memory_space<vmem>>, vector<2x8x128xbf16>
    %5 = arith.extf %4 : vector<2x8x128xbf16> to vector<2x8x128xf32>
    %6 = arith.mulf %3, %5 : vector<2x8x128xf32>
    %7 = arith.mulf %3, %3 : vector<2x8x128xf32>
    %8 = arith.mulf %5, %5 : vector<2x8x128xf32>
    %9 = arith.addf %7, %8 : vector<2x8x128xf32>
    %c0_6 = arith.constant 0 : index
    %c0_7 = arith.constant 0 : index
    %c0_8 = arith.constant 0 : index
    %c0_9 = arith.constant 0 : index
    %10 = vector.load %arg5[%c0_6, %c0_7, %c0_8, %c0_9] : memref<1x2x2x128xf32, #tpu.memory_space<vmem>>, vector<1x2x1x128xf32>
    %11 = vector.shape_cast %10 : vector<1x2x1x128xf32> to vector<2x1x128xf32>
    %cst = arith.constant dense<0.000000e+00> : vector<2x128xf32>
    %12 = vector.multi_reduction <add>, %6, %cst [1] : vector<2x8x128xf32> to vector<2x128xf32>
    %13 = vector.shape_cast %12 : vector<2x128xf32> to vector<2x1x128xf32>
    %14 = arith.addf %11, %13 : vector<2x1x128xf32>
    %c0_10 = arith.constant 0 : index
    %c0_11 = arith.constant 0 : index
    %c0_12 = arith.constant 0 : index
    %c0_13 = arith.constant 0 : index
    %15 = vector.load %arg5[%c0_10, %c0_11, %c0_12, %c0_13] : memref<1x2x2x128xf32, #tpu.memory_space<vmem>>, vector<1x2x1x128xf32>
    %16 = vector.shape_cast %15 : vector<1x2x1x128xf32> to vector<2x1x128xf32>
    %17 = vector.shape_cast %14 : vector<2x1x128xf32> to vector<1x2x1x128xf32>
    tpu.vector_store %arg5[%c0_10, %c0_11, %c0_12, %c0_13], %17 {strides = array<i32>} : memref<1x2x2x128xf32, #tpu.memory_space<vmem>>, vector<1x2x1x128xf32>,
    %c0_14 = arith.constant 0 : index
    %c0_15 = arith.constant 0 : index
    %c1 = arith.constant 1 : index
    %c0_16 = arith.constant 0 : index
    %18 = vector.load %arg5[%c0_14, %c0_15, %c1, %c0_16] : memref<1x2x2x128xf32, #tpu.memory_space<vmem>>, vector<1x2x1x128xf32>
    %19 = vector.shape_cast %18 : vector<1x2x1x128xf32> to vector<2x1x128xf32>
    %cst_17 = arith.constant dense<0.000000e+00> : vector<2x128xf32>
    %20 = vector.multi_reduction <add>, %9, %cst_17 [1] : vector<2x8x128xf32> to vector<2x128xf32>
    %21 = vector.shape_cast %20 : vector<2x128xf32> to vector<2x1x128xf32>
    %22 = arith.addf %19, %21 : vector<2x1x128xf32>
    %c0_18 = arith.constant 0 : index
    %c0_19 = arith.constant 0 : index
    %c1_20 = arith.constant 1 : index
    %c0_21 = arith.constant 0 : index
    %23 = vector.load %arg5[%c0_18, %c0_19, %c1_20, %c0_21] : memref<1x2x2x128xf32, #tpu.memory_space<vmem>>, vector<1x2x1x128xf32>
    %24 = vector.shape_cast %23 : vector<1x2x1x128xf32> to vector<2x1x128xf32>
    %25 = vector.shape_cast %22 : vector<2x1x128xf32> to vector<1x2x1x128xf32>
    tpu.vector_store %arg5[%c0_18, %c0_19, %c1_20, %c0_21], %25 {strides = array<i32>} : memref<1x2x2x128xf32, #tpu.memory_space<vmem>>, vector<1x2x1x128xf32>,
    return
  }
  func.func @transform_0(%arg0: i32, %arg1: i32, %arg2: i32) -> (i32, i32, i32) {
    %c1_i32 = arith.constant 1 : i32
    %0 = arith.muli %arg1, %c1_i32 : i32
    %1 = arith.addi %0, %arg2 : i32
    %c0_i32 = arith.constant 0 : i32
    %c0_i32_0 = arith.constant 0 : i32
    return %arg0, %1, %c0_i32 : i32, i32, i32
  }
  func.func @transform_1(%arg0: i32, %arg1: i32, %arg2: i32) -> (i32, i32, i32) {
    %c1_i32 = arith.constant 1 : i32
    %0 = arith.muli %arg1, %c1_i32 : i32
    %1 = arith.addi %0, %arg2 : i32
    %c0_i32 = arith.constant 0 : i32
    %c0_i32_0 = arith.constant 0 : i32
    return %arg0, %1, %c0_i32 : i32, i32, i32
  }
  func.func @transform_2(%arg0: i32, %arg1: i32, %arg2: i32) -> (i32, i32, i32, i32) {
    %c0_i32 = arith.constant 0 : i32
    %c0_i32_0 = arith.constant 0 : i32
    %c0_i32_1 = arith.constant 0 : i32
    return %arg1, %arg0, %c0_i32, %c0_i32_0 : i32, i32, i32, i32
  }
}

</mosaic_0001>

<bundles_post_ra>
// kernel: tpu_custom_call.1
= control target key start
LH: loop header
LB: loop body
LE: loop exit
PB: predicated region body
PF: predicated region fallthrough
CT: control target
= control target key end

     0   :  { %7 = vsyncpa [#allocation3], 0  ;;  %s236_s0 = inlined_call_operand.hbm [shape: f32[2,8,128], index: 0, kind: input, shape index: {}]   ;;  %s237_s1 = inlined_call_operand.hbm [shape: bf16[2,8,128], index: 1, kind: input, shape index: {}]   ;;  %s238_s2 = inlined_call_operand.hbm [shape: f32[1,2,2,128], index: 2, kind: output, shape index: {}]  }
   0x1   :  { %8 = vsyncpa [#allocation6], 0 }
   0x2   :  { %9 = vsyncpa [#allocation4], 0  ;;  %s202_s9 = smov [#allocation2]  }
   0x3   :  { %s18_s10 = sshll.u32 %s202_s9, 4  ;;  %s19_s10 = int_to_ptr.vmem [resolvable:$true] %s18_s10 }
   0x4   :  { %s144_s11 = scalar_lea.vmem %s19_s10, 256  ;;  %p149_p1 = scmp.lt.s32.totalorder %s19_s10, %s19_s10 }
   0x5   :  { %p145_p0 = scmp.ne.s32.totalorder %s19_s10, %s144_s11  ;;  %p150_p2 = scmp.lt.s32.totalorder %s144_s11, %s144_s11 }
   0x7   :  { %p151_p3 = por %p150_p2, %p149_p1 }
   0x9   :  { %p152_p4 = pnand %p151_p3, %p145_p0 }
   0xb   :  { %155 = shalt.err (!%p152_p4)
}
   0xc   :  { %s203_s12 = smov 128   ;;  %s204_s13 = smov 8  }
   0xd   :  { %24 = dma.hbm_to_vmem [thread:$0]  %s236_s0, 256, %s19_s10, [#allocation3], %s203_s12, %s203_s12, %s204_s13  }
   0xe   :  { %s205_s16 = smov [#allocation5]  }
   0xf   :  { %s33_s17 = sshll.u32 %s205_s16, 4  ;;  %s34_s17 = int_to_ptr.vmem [resolvable:$true] %s33_s17 }
  0x10   :  { %s164_s18 = scalar_lea.vmem %s34_s17, 128  ;;  %p169_p6 = scmp.lt.s32.totalorder %s34_s17, %s34_s17 }
  0x11   :  { %p165_p5 = scmp.ne.s32.totalorder %s34_s17, %s164_s18  ;;  %p170_p7 = scmp.lt.s32.totalorder %s164_s18, %s164_s18 }
  0x13   :  { %p171_p8 = por %p170_p7, %p169_p6 }
  0x15   :  { %p172_p9 = pnand %p171_p8, %p165_p5 }
  0x17   :  { %175 = shalt.err (!%p172_p9)
}
  0x18   :  { %s206_s19 = smov 64   ;;  %s207_s20 = smov 4  }
  0x19   :  { %39 = dma.hbm_to_vmem [thread:$0]  %s237_s1, 128, %s34_s17, [#allocation6], %s206_s19, %s206_s19, %s207_s20  }
  0x1a   :  { %196 = dma.done.wait [#allocation3], 256  }
  0x1b   :  { %197 = vsyncadd [#allocation3], 4294967040 }
  0x1c   :  { %198 = dma.done.wait [#allocation6], 128  }
  0x1d   :  { %199 = vsyncadd [#allocation6], 4294967168  ;;  %v208_v0 = vmov 0.0   ;;  %v54_v1 = vld [vmem:[#allocation2] sm:$0xff]  ;;  %v123_v2 = vld [vmem:[#allocation5] sm:$0xff]   ;;  %s209_s0 = smov [#allocation7]  }
  0x1e   :  { %52 = vst [vmem:[#allocation7] sm:$0x3] %v208_v0  ;;  %53 = vst [vmem:[#allocation7 + $0x2] sm:$0x3] %v208_v0  ;;  %v55_v3 = vld [vmem:[#allocation2 + $0x8] sm:$0xff]  ;;  %v124_v4 = vunpack.c.l.bf16 %v123_v2  ;;  %v125_v5 = vunpack.c.h.bf16 %v123_v2  ;;  %v62_v6 = vmul.f32 %v54_v1, %v54_v1  ;;  %s109_s1 = sshll.u32 %s209_s0, 4  ;;  %s110_s1 = int_to_ptr.vmem [resolvable:$true] %s109_s1 }
  0x1f   :  { %v63_v7 = vmul.f32 %v55_v3, %v55_v3  ;;  %s176_s23 = scalar_lea.vmem %s110_s1, 64  ;;  %p181_p11 = scmp.lt.s32.totalorder %s110_s1, %s110_s1 }
  0x20   :  { %v60_v8 = vmul.f32 %v124_v4, %v54_v1  ;;  %v61_v9 = vmul.f32 %v125_v5, %v55_v3  ;;  %v64_v10 = vmul.f32 %v124_v4, %v124_v4  ;;  %v65_v11 = vmul.f32 %v125_v5, %v125_v5  ;;  %p177_p10 = scmp.ne.s32.totalorder %s110_s1, %s176_s23  ;;  %p182_p12 = scmp.lt.s32.totalorder %s176_s23, %s176_s23 }
  0x22   :  { %v70_v12 = vrot.slane %v60_v8, 4  ;;  %v76_v13 = vrot.slane %v61_v9, 4  ;;  %v66_v14 = vadd.f32 %v64_v10, %v62_v6  ;;  %v67_v15 = vadd.f32 %v65_v11, %v63_v7  ;;  %p183_p13 = por %p182_p12, %p181_p11 }
  0x24   :  { %v71_v16 = vadd.f32 %v70_v12, %v60_v8  ;;  %v77_v17 = vadd.f32 %v76_v13, %v61_v9  ;;  %v88_v18 = vrot.slane %v66_v14, 4  ;;  %v94_v19 = vrot.slane %v67_v15, 4  ;;  %p184_p0 = pnand %p183_p13, %p177_p10 }
  0x25   :  { %v68_v32 = vld [vmem:[#allocation7] sm:$0x1]  ;;  %v69_v33 = vld [vmem:[#allocation7 + $0x2] sm:$0x1]  ;;  %v86_v38 = vld [vmem:[#allocation7 + $0x1] sm:$0x1] }
  0x26   :  { %v72_v20 = vrot.slane %v71_v16, 2  ;;  %v78_v21 = vrot.slane %v77_v17, 2  ;;  %v89_v22 = vadd.f32 %v88_v18, %v66_v14  ;;  %v95_v23 = vadd.f32 %v94_v19, %v67_v15  ;;  %v87_v39 = vld [vmem:[#allocation7 + $0x3] sm:$0x1] }
  0x28   :  { %v73_v24 = vadd.f32 %v72_v20, %v71_v16  ;;  %v79_v25 = vadd.f32 %v78_v21, %v77_v17  ;;  %v90_v26 = vrot.slane %v89_v22, 2  ;;  %v96_v27 = vrot.slane %v95_v23, 2 }
  0x2a   :  { %v74_v28 = vrot.slane %v73_v24, 1  ;;  %v80_v29 = vrot.slane %v79_v25, 1  ;;  %v91_v30 = vadd.f32 %v90_v26, %v89_v22  ;;  %v97_v31 = vadd.f32 %v96_v27, %v95_v23 }
  0x2c   :  { %v75_v34 = vadd.f32 %v74_v28, %v73_v24  ;;  %v81_v35 = vadd.f32 %v80_v29, %v79_v25  ;;  %v92_v36 = vrot.slane %v91_v30, 1  ;;  %v98_v37 = vrot.slane %v97_v31, 1 }
  0x2e   :  { %v82_v40 = vadd.f32 %v75_v34, %v68_v32  ;;  %v83_v41 = vadd.f32 %v81_v35, %v69_v33  ;;  %v93_v42 = vadd.f32 %v92_v36, %v91_v30  ;;  %v99_v43 = vadd.f32 %v98_v37, %v97_v31 }
  0x30   :  { %84 = vst [vmem:[#allocation7] sm:$0x1] %v82_v40  ;;  %85 = vst [vmem:[#allocation7 + $0x2] sm:$0x1] %v83_v41  ;;  %v100_v44 = vadd.f32 %v93_v42, %v86_v38  ;;  %v101_v45 = vadd.f32 %v99_v43, %v87_v39 }
  0x32   :  { %102 = vst [vmem:[#allocation7 + $0x1] sm:$0x1] %v100_v44  ;;  %103 = vst [vmem:[#allocation7 + $0x3] sm:$0x1] %v101_v45 }
  0x33   :  { %187 = shalt.err (!%p184_p0)
}
  0x34   :  { %s210_s24 = smov 32   ;;  %s211_s25 = smov 2  }
  0x35   :  { %115 = dma.vmem_to_hbm [thread:$0]  %s110_s1, 64, %s238_s2, [#allocation4], %s210_s24, %s210_s24, %s211_s25  }
  0x36   :  { %200 = dma.done.wait [#allocation4], 64  }
  0x37   :  { %201 = vsyncadd [#allocation4], 4294967232 }
  0x38   :  { %119 = vsyncpa [#allocation3], 1 }
  0x39   :  { %120 = vsyncpa [#allocation6], 1 }
  0x3a   :  { %121 = vsyncpa [#allocation4], 1 }

</bundles_post_ra>
